<compile_context>
chip_gen: v5e
topology: v5e:2x2
jax: 0.10.0
libtpu: 0.0.40
codegen_flags: <defaults>
</compile_context>

<pallas_src>
import numpy as np
import jax
import jax.numpy as jnp
from jax.experimental import pallas as pl
from jax.experimental.pallas import tpu as pltpu

# ----------------------------- problem sizes (small, synthetic) -----------------------------
B = 2          # batch
J_IN = 15      # input pose joints (joint_num = 15 in pointcloud2mesh_net)
V = 128        # synthetic mesh vertex count (real SMPL: 6890)
H_MESH = 64    # hidden dim of the simplified meshnet
K17 = 17       # H36M joint-regressor joints
K24 = 24       # SMPL joint-regressor joints
NBETA = 10     # SMPL shape coefficients
K_STACK = 128  # stacked-regressor width: 15 (pose) + 24 (skeleton) + 23 (parent diffs) + 66 pad
NB_PAD = 128   # lane-padded beta-regressor output width (betas live in lanes [0, NBETA))

# SMPL kinematic tree (24 joints)
SMPL_PARENTS = np.array(
    [-1, 0, 0, 0, 1, 2, 3, 4, 5, 6, 7, 8, 9, 9, 9, 12, 13, 14, 16, 17, 18, 19, 20, 21],
    dtype=np.int32)

# synthetic H36M_J17_TO_J15 selection (15 of the 17 regressed joints)
H36M_J17_TO_J15 = np.array([0, 1, 2, 3, 4, 5, 6, 8, 10, 11, 12, 13, 14, 15, 16], dtype=np.int32)


def vspec():
    return pl.BlockSpec(memory_space=pltpu.MemorySpace.VMEM)


# ----------------------------------- fused Pallas kernel ------------------------------------
def p2m_svd_fused_kernel(x_ref, w1_ref, b1_ref, w2_ref, b2_ref,
                         rT_ref, weff_ref, beff_ref, vt_ref, sdirs_ref,
                         mesh_ref, reg_ref, betas_ref, verts_ref, trans_ref, shift_ref):
    # ---- meshnet MLP (stand-in for the Chebyshev GCN) : (B, 45) -> (B, 3*V) coord-major ----
    h = jnp.dot(x_ref[...], w1_ref[...], preferred_element_type=jnp.float32) + b1_ref[...]
    h = jnp.maximum(h, 0.0)
    mesh_flat = jnp.dot(h, w2_ref[...], preferred_element_type=jnp.float32) + b2_ref[...]  # (B, 3V)

    # ---- all joint regressors + parent-diff matrix in ONE lane-padded stacked matrix (V, 128) --
    # Columns: [jr17_sel (15) | jr24 (24) | d_mat@jr24 (23) | zero pad (66)].
    rT = rT_ref[...]
    mesh_c = []
    reg_c = []
    for c in range(3):                                     # x / y / z, each lane-dense (B, V)
        m = mesh_flat[:, c * V:(c + 1) * V]                # 128-aligned lane slice (no copy)
        r = jnp.dot(m, rT, preferred_element_type=jnp.float32)   # (B, 128)
        mesh_ref[c] = m                                    # unmasked full-lane store
        reg_ref[c] = r                                     # unmasked full-lane store
        mesh_c.append(m)
        reg_c.append(r)

    # ---- bone lengths + folded (activation-free) beta regressor ----
    # norms lanes [39, 62) hold rel_ps; all other lanes are zeroed by weff rows / rT pad cols.
    sumsq = reg_c[0] * reg_c[0] + reg_c[1] * reg_c[1] + reg_c[2] * reg_c[2]    # (B, 128)
    norms = jnp.sqrt(sumsq)
    betas_pad = jnp.dot(norms, weff_ref[...],
                        preferred_element_type=jnp.float32) + beff_ref[...]    # (B, 128)
    betas_ref[...] = betas_pad                             # unmasked; wrapper slices [:, :NBETA]

    # ---- simplified meshik: shape blendshapes + per-batch translation fit ----
    # sdirs is zero-row-padded to (128, 3V) so the padded beta slab feeds the MXU directly.
    shaped_flat = vt_ref[...] + jnp.dot(betas_pad, sdirs_ref[...],
                                        preferred_element_type=jnp.float32)   # (B, 3V)
    for c in range(3):
        shp = shaped_flat[:, c * V:(c + 1) * V]                                # (B, V)
        t_c = jnp.mean(mesh_c[c] - shp, axis=-1, keepdims=True)               # (B, 1)
        v = shp + t_c
        verts_ref[c] = v
        shift_ref[c] = v - mesh_c[c]
        trans_ref[c] = t_c                                                     # tiny (B, 1) store


# -------------------------------------- wrapper ----------------------------------------------
def p2m_svd_forward(params, pose_input):
    bsz = pose_input.shape[0]
    x = pose_input.reshape(bsz, -1).astype(jnp.float32)           # (B, J_IN*3)

    out_shapes = (
        jax.ShapeDtypeStruct((3, bsz, V), jnp.float32),           # mesh (coord-major)
        jax.ShapeDtypeStruct((3, bsz, K_STACK), jnp.float32),     # stacked regressor output
        jax.ShapeDtypeStruct((bsz, NB_PAD), jnp.float32),         # betas (lane-padded)
        jax.ShapeDtypeStruct((3, bsz, V), jnp.float32),           # refined verts (coord-major)
        jax.ShapeDtypeStruct((3, bsz, 1), jnp.float32),           # translation per coord
        jax.ShapeDtypeStruct((3, bsz, V), jnp.float32),           # vert shift (coord-major)
    )

    mesh_cm, reg_cm, betas_pad, verts_cm, trans_cm, shift_cm = pl.pallas_call(
        p2m_svd_fused_kernel,
        out_shape=out_shapes,
        in_specs=[vspec() for _ in range(10)],
        out_specs=tuple(vspec() for _ in range(6)),
    )(x,
      params["mn_w1"], params["mn_b1"], params["mn_w2"], params["mn_b2"],
      params["r_stack_T"], params["w_eff_pad"], params["b_eff_pad"],
      params["vt_flat"], params["sdirs_pad"])

    # layout plumbing back to the PyTorch (B, K/V, 3) convention (outside the kernel)
    mesh_out = jnp.transpose(mesh_cm, (1, 2, 0))                              # (B, V, 3)
    pred_pose = jnp.transpose(reg_cm[:, :, 0:15], (1, 2, 0))                  # (B, 15, 3)
    pose_skeleton = jnp.transpose(reg_cm[:, :, 15:15 + K24], (1, 2, 0))       # (B, 24, 3)
    verts = jnp.transpose(verts_cm, (1, 2, 0))                                # (B, V, 3)
    shift = jnp.transpose(shift_cm, (1, 2, 0))                                # (B, V, 3)
    trans = jnp.transpose(trans_cm[:, :, 0], (1, 0))                          # (B, 3)
    betas = betas_pad[:, :NBETA]                                              # (B, 10)

    # TODO(synk): theta would come from the SVD-based IK; return identity quaternions.
    theta = jnp.tile(jnp.array([1.0, 0.0, 0.0, 0.0], jnp.float32), (bsz, K24, 1))

    return {
        "mesh_out": mesh_out,
        "pose": pred_pose,
        "mesh_refine": verts,
        "vert_shift": [shift],
        "pose_theta": theta,
        "pose_beta": betas,
        "trans": trans,
        "pose_skeleton": pose_skeleton,
    }


# --------------------------------- deterministic params -------------------------------------
def build_params(key):
    ks = jax.random.split(key, 16)

    def nrm(k, shape, scale=0.05):
        return (scale * jax.random.normal(k, shape)).astype(jnp.float32)

    def regressor(k, rows):
        w = jnp.abs(jax.random.normal(k, (rows, V))).astype(jnp.float32)
        return w / jnp.sum(w, axis=1, keepdims=True)   # rows sum to 1, like a vertex regressor

    # parent-difference matrix: diff = D @ skeleton,  D[i-1, i] = 1, D[i-1, parents[i]] = -1
    d_np = np.zeros((K24 - 1, K24), np.float32)
    for i in range(1, K24):
        d_np[i - 1, i] = 1.0
        d_np[i - 1, SMPL_PARENTS[i]] = -1.0
    d_mat = jnp.asarray(d_np)

    # ---- raw (logical) parameters ----
    mn_w1 = nrm(ks[0], (J_IN * 3, H_MESH))
    mn_b1 = nrm(ks[1], (1, H_MESH))
    # TODO(synk): synthetic meshnet output layer emits coordinate-major (x..|y..|z..) layout.
    mn_w2 = nrm(ks[2], (H_MESH, 3 * V))
    mn_b2 = nrm(ks[3], (1, 3 * V))

    jr17 = regressor(ks[4], K17)
    jr24 = regressor(ks[5], K24)
    v_template = nrm(ks[6], (V, 3), scale=0.2)
    shapedirs = nrm(ks[7], (NBETA, V, 3), scale=0.02)

    br_w1 = nrm(ks[8], (69, 96));  br_b1 = nrm(ks[9], (1, 96))
    br_w2 = nrm(ks[10], (96, 24)); br_b2 = nrm(ks[11], (1, 24))
    br_w3 = nrm(ks[12], (24, NBETA)); br_b3 = nrm(ks[13], (1, NBETA))

    # ---- forward-time constants (folded / stacked / lane-padded once at build time) ----
    # Stacked regressor: [jr17_selected (15) | jr24 (24) | d_mat@jr24 (23) | pad (66)] -> (128, V)
    jr17_sel = jr17[jnp.asarray(H36M_J17_TO_J15)]
    dj = d_mat @ jr24
    pad = jnp.zeros((K_STACK - 15 - K24 - (K24 - 1), V), jnp.float32)
    r_stack_T = jnp.concatenate([jr17_sel, jr24, dj, pad], axis=0).T          # (V, 128)

    # Fold the activation-free beta MLP: betas = inp_feat @ w_fold + b_fold  (exact, no nonlin.)
    w_fold = br_w1 @ br_w2 @ br_w3                                            # (69, 10)
    b_fold = (br_b1 @ br_w2 + br_b2) @ br_w3 + br_b3                          # (1, 10)
    # Template bone lengths (depend only on params).
    tsk = jr24 @ v_template                                                   # (24, 3)
    rel_ts = jnp.sqrt(jnp.sum((d_mat @ tsk) ** 2, axis=-1))                   # (23,)
    # inp_feat = [rel_ps, rel_ts, rel_ps - rel_ts]  =>  betas = rel_ps @ w_eff + b_eff
    w_eff = w_fold[0:23] + w_fold[46:69]                                      # (23, 10)
    b_eff = rel_ts[None, :] @ (w_fold[23:46] - w_fold[46:69]) + b_fold        # (1, 10)
    # Lane-pad so it directly consumes lanes [39, 62) of the stacked-regressor norms and emits
    # a full-128-lane beta slab (lanes >= NBETA are zero).
    w_eff_pad = jnp.zeros((K_STACK, NB_PAD), jnp.float32)
    w_eff_pad = w_eff_pad.at[15 + K24:15 + K24 + (K24 - 1), :NBETA].set(w_eff)
    b_eff_pad = jnp.zeros((1, NB_PAD), jnp.float32).at[:, :NBETA].set(b_eff)

    # Coordinate-major flat template / shape blendshapes (rows >= NBETA zero-padded so the
    # padded beta slab can be used as the matmul LHS directly).
    vt_flat = v_template.T.reshape(1, 3 * V)                                  # (1, 3V)
    sdirs_flat = jnp.transpose(shapedirs, (0, 2, 1)).reshape(NBETA, 3 * V)    # (10, 3V)
    sdirs_pad = jnp.zeros((NB_PAD, 3 * V), jnp.float32).at[:NBETA].set(sdirs_flat)

    return {
        "mn_w1": mn_w1, "mn_b1": mn_b1, "mn_w2": mn_w2, "mn_b2": mn_b2,
        "r_stack_T": r_stack_T,
        "w_eff_pad": w_eff_pad, "b_eff_pad": b_eff_pad,
        "vt_flat": vt_flat, "sdirs_pad": sdirs_pad,
    }


if __name__ == "__main__":
    key = jax.random.PRNGKey(0)
    pkey, xkey = jax.random.split(key)
    params = build_params(pkey)
    pose_input = jax.random.normal(xkey, (B, J_IN, 3), dtype=jnp.float32)

    ret = p2m_svd_forward(params, pose_input)
    jax.block_until_ready(ret)

    # light shape sanity checks
    assert ret["mesh_out"].shape == (B, V, 3)
    assert ret["pose"].shape == (B, 15, 3)
    assert ret["mesh_refine"].shape == (B, V, 3)
    assert ret["pose_beta"].shape == (B, NBETA)
    assert ret["trans"].shape == (B, 3)
    assert ret["vert_shift"][0].shape == (B, V, 3)
    assert ret["pose_skeleton"].shape == (B, K24, 3)
    assert ret["pose_theta"].shape == (B, K24, 4)
    assert bool(jnp.all(jnp.isfinite(ret["mesh_refine"])))
    assert bool(jnp.all(jnp.isfinite(ret["pose_beta"])))

    print("KERNEL_OK")
</pallas_src>

<mosaic_0001>
module attributes {stable_mosaic.version = 11 : i64} {
  func.func @p2m_svd_fused_kernel(%arg0: memref<2x45xf32, #tpu.memory_space<vmem>>, %arg1: memref<45x64xf32, #tpu.memory_space<vmem>>, %arg2: memref<1x64xf32, #tpu.memory_space<vmem>>, %arg3: memref<64x384xf32, #tpu.memory_space<vmem>>, %arg4: memref<1x384xf32, #tpu.memory_space<vmem>>, %arg5: memref<128x128xf32, #tpu.memory_space<vmem>>, %arg6: memref<128x128xf32, #tpu.memory_space<vmem>>, %arg7: memref<1x128xf32, #tpu.memory_space<vmem>>, %arg8: memref<1x384xf32, #tpu.memory_space<vmem>>, %arg9: memref<128x384xf32, #tpu.memory_space<vmem>>, %arg10: memref<3x2x128xf32, #tpu.memory_space<vmem>>, %arg11: memref<3x2x128xf32, #tpu.memory_space<vmem>>, %arg12: memref<2x128xf32, #tpu.memory_space<vmem>>, %arg13: memref<3x2x128xf32, #tpu.memory_space<vmem>>, %arg14: memref<3x2x1xf32, #tpu.memory_space<vmem>>, %arg15: memref<3x2x128xf32, #tpu.memory_space<vmem>>) attributes {dimension_semantics = [], scalar_prefetch = 0 : i64, scratch_operands = 0 : i64, tpu.core_type = #tpu.core_type<tc>} {
    %c0 = arith.constant 0 : index
    %c0_0 = arith.constant 0 : index
    %0 = vector.load %arg0[%c0, %c0_0] : memref<2x45xf32, #tpu.memory_space<vmem>>, vector<2x45xf32>
    %c0_1 = arith.constant 0 : index
    %c0_2 = arith.constant 0 : index
    %1 = vector.load %arg1[%c0_1, %c0_2] : memref<45x64xf32, #tpu.memory_space<vmem>>, vector<45x64xf32>
    %cst = arith.constant dense<0.000000e+00> : vector<2x64xf32>
    %2 = tpu.matmul %0, %1, %cst {dimension_numbers = #tpu.dot_dimension_numbers<[1], [0], [0], [1], [0, 0, 1, 1], [], []>} : vector<2x45xf32>, vector<45x64xf32>, vector<2x64xf32> -> vector<2x64xf32>
    %c0_3 = arith.constant 0 : index
    %c0_4 = arith.constant 0 : index
    %3 = vector.load %arg2[%c0_3, %c0_4] : memref<1x64xf32, #tpu.memory_space<vmem>>, vector<1x64xf32>
    %4 = vector.broadcast %3 : vector<1x64xf32> to vector<2x64xf32>
    %5 = arith.addf %2, %4 : vector<2x64xf32>
    %cst_5 = arith.constant 0.000000e+00 : f32
    %6 = vector.broadcast %cst_5 : f32 to vector<2x64xf32>
    %7 = arith.maximumf %5, %6 : vector<2x64xf32>
    %c0_6 = arith.constant 0 : index
    %c0_7 = arith.constant 0 : index
    %8 = vector.load %arg3[%c0_6, %c0_7] : memref<64x384xf32, #tpu.memory_space<vmem>>, vector<64x384xf32>
    %cst_8 = arith.constant dense<0.000000e+00> : vector<2x384xf32>
    %9 = tpu.matmul %7, %8, %cst_8 {dimension_numbers = #tpu.dot_dimension_numbers<[1], [0], [0], [1], [0, 0, 1, 1], [], []>} : vector<2x64xf32>, vector<64x384xf32>, vector<2x384xf32> -> vector<2x384xf32>
    %c0_9 = arith.constant 0 : index
    %c0_10 = arith.constant 0 : index
    %10 = vector.load %arg4[%c0_9, %c0_10] : memref<1x384xf32, #tpu.memory_space<vmem>>, vector<1x384xf32>
    %11 = vector.broadcast %10 : vector<1x384xf32> to vector<2x384xf32>
    %12 = arith.addf %9, %11 : vector<2x384xf32>
    %c0_11 = arith.constant 0 : index
    %c0_12 = arith.constant 0 : index
    %13 = vector.load %arg5[%c0_11, %c0_12] : memref<128x128xf32, #tpu.memory_space<vmem>>, vector<128x128xf32>
    %14 = vector.extract_strided_slice %12 {offsets = [0, 0], sizes = [2, 128], strides = [1, 1]} : vector<2x384xf32> to vector<2x128xf32>
    %cst_13 = arith.constant dense<0.000000e+00> : vector<2x128xf32>
    %15 = tpu.matmul %14, %13, %cst_13 {dimension_numbers = #tpu.dot_dimension_numbers<[1], [0], [0], [1], [0, 0, 1, 1], [], []>} : vector<2x128xf32>, vector<128x128xf32>, vector<2x128xf32> -> vector<2x128xf32>
    %c0_14 = arith.constant 0 : index
    %c0_15 = arith.constant 0 : index
    %c0_16 = arith.constant 0 : index
    %16 = vector.load %arg10[%c0_14, %c0_15, %c0_16] : memref<3x2x128xf32, #tpu.memory_space<vmem>>, vector<1x2x128xf32>
    %17 = vector.shape_cast %16 : vector<1x2x128xf32> to vector<2x128xf32>
    %18 = vector.shape_cast %14 : vector<2x128xf32> to vector<1x2x128xf32>
    tpu.vector_store %arg10[%c0_14, %c0_15, %c0_16], %18 {strides = array<i32>} : memref<3x2x128xf32, #tpu.memory_space<vmem>>, vector<1x2x128xf32>,
    %c0_17 = arith.constant 0 : index
    %c0_18 = arith.constant 0 : index
    %c0_19 = arith.constant 0 : index
    %19 = vector.load %arg11[%c0_17, %c0_18, %c0_19] : memref<3x2x128xf32, #tpu.memory_space<vmem>>, vector<1x2x128xf32>
    %20 = vector.shape_cast %19 : vector<1x2x128xf32> to vector<2x128xf32>
    %21 = vector.shape_cast %15 : vector<2x128xf32> to vector<1x2x128xf32>
    tpu.vector_store %arg11[%c0_17, %c0_18, %c0_19], %21 {strides = array<i32>} : memref<3x2x128xf32, #tpu.memory_space<vmem>>, vector<1x2x128xf32>,
    %22 = vector.extract_strided_slice %12 {offsets = [0, 128], sizes = [2, 128], strides = [1, 1]} : vector<2x384xf32> to vector<2x128xf32>
    %cst_20 = arith.constant dense<0.000000e+00> : vector<2x128xf32>
    %23 = tpu.matmul %22, %13, %cst_20 {dimension_numbers = #tpu.dot_dimension_numbers<[1], [0], [0], [1], [0, 0, 1, 1], [], []>} : vector<2x128xf32>, vector<128x128xf32>, vector<2x128xf32> -> vector<2x128xf32>
    %c1 = arith.constant 1 : index
    %c0_21 = arith.constant 0 : index
    %c0_22 = arith.constant 0 : index
    %24 = vector.load %arg10[%c1, %c0_21, %c0_22] : memref<3x2x128xf32, #tpu.memory_space<vmem>>, vector<1x2x128xf32>
    %25 = vector.shape_cast %24 : vector<1x2x128xf32> to vector<2x128xf32>
    %26 = vector.shape_cast %22 : vector<2x128xf32> to vector<1x2x128xf32>
    tpu.vector_store %arg10[%c1, %c0_21, %c0_22], %26 {strides = array<i32>} : memref<3x2x128xf32, #tpu.memory_space<vmem>>, vector<1x2x128xf32>,
    %c1_23 = arith.constant 1 : index
    %c0_24 = arith.constant 0 : index
    %c0_25 = arith.constant 0 : index
    %27 = vector.load %arg11[%c1_23, %c0_24, %c0_25] : memref<3x2x128xf32, #tpu.memory_space<vmem>>, vector<1x2x128xf32>
    %28 = vector.shape_cast %27 : vector<1x2x128xf32> to vector<2x128xf32>
    %29 = vector.shape_cast %23 : vector<2x128xf32> to vector<1x2x128xf32>
    tpu.vector_store %arg11[%c1_23, %c0_24, %c0_25], %29 {strides = array<i32>} : memref<3x2x128xf32, #tpu.memory_space<vmem>>, vector<1x2x128xf32>,
    %30 = vector.extract_strided_slice %12 {offsets = [0, 256], sizes = [2, 128], strides = [1, 1]} : vector<2x384xf32> to vector<2x128xf32>
    %cst_26 = arith.constant dense<0.000000e+00> : vector<2x128xf32>
    %31 = tpu.matmul %30, %13, %cst_26 {dimension_numbers = #tpu.dot_dimension_numbers<[1], [0], [0], [1], [0, 0, 1, 1], [], []>} : vector<2x128xf32>, vector<128x128xf32>, vector<2x128xf32> -> vector<2x128xf32>
    %c2 = arith.constant 2 : index
    %c0_27 = arith.constant 0 : index
    %c0_28 = arith.constant 0 : index
    %32 = vector.load %arg10[%c2, %c0_27, %c0_28] : memref<3x2x128xf32, #tpu.memory_space<vmem>>, vector<1x2x128xf32>
    %33 = vector.shape_cast %32 : vector<1x2x128xf32> to vector<2x128xf32>
    %34 = vector.shape_cast %30 : vector<2x128xf32> to vector<1x2x128xf32>
    tpu.vector_store %arg10[%c2, %c0_27, %c0_28], %34 {strides = array<i32>} : memref<3x2x128xf32, #tpu.memory_space<vmem>>, vector<1x2x128xf32>,
    %c2_29 = arith.constant 2 : index
    %c0_30 = arith.constant 0 : index
    %c0_31 = arith.constant 0 : index
    %35 = vector.load %arg11[%c2_29, %c0_30, %c0_31] : memref<3x2x128xf32, #tpu.memory_space<vmem>>, vector<1x2x128xf32>
    %36 = vector.shape_cast %35 : vector<1x2x128xf32> to vector<2x128xf32>
    %37 = vector.shape_cast %31 : vector<2x128xf32> to vector<1x2x128xf32>
    tpu.vector_store %arg11[%c2_29, %c0_30, %c0_31], %37 {strides = array<i32>} : memref<3x2x128xf32, #tpu.memory_space<vmem>>, vector<1x2x128xf32>,
    %38 = arith.mulf %15, %15 : vector<2x128xf32>
    %39 = arith.mulf %23, %23 : vector<2x128xf32>
    %40 = arith.addf %38, %39 : vector<2x128xf32>
    %41 = arith.mulf %31, %31 : vector<2x128xf32>
    %42 = arith.addf %40, %41 : vector<2x128xf32>
    %43 = math.sqrt %42 : vector<2x128xf32>
    %c0_32 = arith.constant 0 : index
    %c0_33 = arith.constant 0 : index
    %44 = vector.load %arg6[%c0_32, %c0_33] : memref<128x128xf32, #tpu.memory_space<vmem>>, vector<128x128xf32>
    %cst_34 = arith.constant dense<0.000000e+00> : vector<2x128xf32>
    %45 = tpu.matmul %43, %44, %cst_34 {dimension_numbers = #tpu.dot_dimension_numbers<[1], [0], [0], [1], [0, 0, 1, 1], [], []>} : vector<2x128xf32>, vector<128x128xf32>, vector<2x128xf32> -> vector<2x128xf32>
    %c0_35 = arith.constant 0 : index
    %c0_36 = arith.constant 0 : index
    %46 = vector.load %arg7[%c0_35, %c0_36] : memref<1x128xf32, #tpu.memory_space<vmem>>, vector<1x128xf32>
    %47 = vector.broadcast %46 : vector<1x128xf32> to vector<2x128xf32>
    %48 = arith.addf %45, %47 : vector<2x128xf32>
    %c0_37 = arith.constant 0 : index
    %c0_38 = arith.constant 0 : index
    %49 = vector.load %arg12[%c0_37, %c0_38] : memref<2x128xf32, #tpu.memory_space<vmem>>, vector<2x128xf32>
    tpu.vector_store %arg12[%c0_37, %c0_38], %48 {strides = array<i32>} : memref<2x128xf32, #tpu.memory_space<vmem>>, vector<2x128xf32>,
    %c0_39 = arith.constant 0 : index
    %c0_40 = arith.constant 0 : index
    %50 = vector.load %arg8[%c0_39, %c0_40] : memref<1x384xf32, #tpu.memory_space<vmem>>, vector<1x384xf32>
    %c0_41 = arith.constant 0 : index
    %c0_42 = arith.constant 0 : index
    %51 = vector.load %arg9[%c0_41, %c0_42] : memref<128x384xf32, #tpu.memory_space<vmem>>, vector<128x384xf32>
    %cst_43 = arith.constant dense<0.000000e+00> : vector<2x384xf32>
    %52 = tpu.matmul %48, %51, %cst_43 {dimension_numbers = #tpu.dot_dimension_numbers<[1], [0], [0], [1], [0, 0, 1, 1], [], []>} : vector<2x128xf32>, vector<128x384xf32>, vector<2x384xf32> -> vector<2x384xf32>
    %53 = vector.broadcast %50 : vector<1x384xf32> to vector<2x384xf32>
    %54 = arith.addf %53, %52 : vector<2x384xf32>
    %55 = vector.extract_strided_slice %54 {offsets = [0, 0], sizes = [2, 128], strides = [1, 1]} : vector<2x384xf32> to vector<2x128xf32>
    %56 = arith.subf %14, %55 : vector<2x128xf32>
    %cst_44 = arith.constant dense<0.000000e+00> : vector<2xf32>
    %57 = vector.multi_reduction <add>, %56, %cst_44 [1] : vector<2x128xf32> to vector<2xf32>
    %58 = vector.shape_cast %57 : vector<2xf32> to vector<2x1xf32>
    %cst_45 = arith.constant 1.280000e+02 : f32
    %59 = vector.broadcast %cst_45 : f32 to vector<2x1xf32>
    %60 = arith.divf %58, %59 : vector<2x1xf32>
    %61 = vector.broadcast %60 : vector<2x1xf32> to vector<2x128xf32>
    %62 = arith.addf %55, %61 : vector<2x128xf32>
    %c0_46 = arith.constant 0 : index
    %c0_47 = arith.constant 0 : index
    %c0_48 = arith.constant 0 : index
    %63 = vector.load %arg13[%c0_46, %c0_47, %c0_48] : memref<3x2x128xf32, #tpu.memory_space<vmem>>, vector<1x2x128xf32>
    %64 = vector.shape_cast %63 : vector<1x2x128xf32> to vector<2x128xf32>
    %65 = vector.shape_cast %62 : vector<2x128xf32> to vector<1x2x128xf32>
    tpu.vector_store %arg13[%c0_46, %c0_47, %c0_48], %65 {strides = array<i32>} : memref<3x2x128xf32, #tpu.memory_space<vmem>>, vector<1x2x128xf32>,
    %66 = arith.subf %62, %14 : vector<2x128xf32>
    %c0_49 = arith.constant 0 : index
    %c0_50 = arith.constant 0 : index
    %c0_51 = arith.constant 0 : index
    %67 = vector.load %arg15[%c0_49, %c0_50, %c0_51] : memref<3x2x128xf32, #tpu.memory_space<vmem>>, vector<1x2x128xf32>
    %68 = vector.shape_cast %67 : vector<1x2x128xf32> to vector<2x128xf32>
    %69 = vector.shape_cast %66 : vector<2x128xf32> to vector<1x2x128xf32>
    tpu.vector_store %arg15[%c0_49, %c0_50, %c0_51], %69 {strides = array<i32>} : memref<3x2x128xf32, #tpu.memory_space<vmem>>, vector<1x2x128xf32>,
    %c0_52 = arith.constant 0 : index
    %c0_53 = arith.constant 0 : index
    %c0_54 = arith.constant 0 : index
    %70 = vector.load %arg14[%c0_52, %c0_53, %c0_54] : memref<3x2x1xf32, #tpu.memory_space<vmem>>, vector<1x2x1xf32>
    %71 = vector.shape_cast %70 : vector<1x2x1xf32> to vector<2x1xf32>
    %72 = vector.shape_cast %60 : vector<2x1xf32> to vector<1x2x1xf32>
    tpu.vector_store %arg14[%c0_52, %c0_53, %c0_54], %72 {strides = array<i32>} : memref<3x2x1xf32, #tpu.memory_space<vmem>>, vector<1x2x1xf32>,
    %73 = vector.extract_strided_slice %54 {offsets = [0, 128], sizes = [2, 128], strides = [1, 1]} : vector<2x384xf32> to vector<2x128xf32>
    %74 = arith.subf %22, %73 : vector<2x128xf32>
    %cst_55 = arith.constant dense<0.000000e+00> : vector<2xf32>
    %75 = vector.multi_reduction <add>, %74, %cst_55 [1] : vector<2x128xf32> to vector<2xf32>
    %76 = vector.shape_cast %75 : vector<2xf32> to vector<2x1xf32>
    %cst_56 = arith.constant 1.280000e+02 : f32
    %77 = vector.broadcast %cst_56 : f32 to vector<2x1xf32>
    %78 = arith.divf %76, %77 : vector<2x1xf32>
    %79 = vector.broadcast %78 : vector<2x1xf32> to vector<2x128xf32>
    %80 = arith.addf %73, %79 : vector<2x128xf32>
    %c1_57 = arith.constant 1 : index
    %c0_58 = arith.constant 0 : index
    %c0_59 = arith.constant 0 : index
    %81 = vector.load %arg13[%c1_57, %c0_58, %c0_59] : memref<3x2x128xf32, #tpu.memory_space<vmem>>, vector<1x2x128xf32>
    %82 = vector.shape_cast %81 : vector<1x2x128xf32> to vector<2x128xf32>
    %83 = vector.shape_cast %80 : vector<2x128xf32> to vector<1x2x128xf32>
    tpu.vector_store %arg13[%c1_57, %c0_58, %c0_59], %83 {strides = array<i32>} : memref<3x2x128xf32, #tpu.memory_space<vmem>>, vector<1x2x128xf32>,
    %84 = arith.subf %80, %22 : vector<2x128xf32>
    %c1_60 = arith.constant 1 : index
    %c0_61 = arith.constant 0 : index
    %c0_62 = arith.constant 0 : index
    %85 = vector.load %arg15[%c1_60, %c0_61, %c0_62] : memref<3x2x128xf32, #tpu.memory_space<vmem>>, vector<1x2x128xf32>
    %86 = vector.shape_cast %85 : vector<1x2x128xf32> to vector<2x128xf32>
    %87 = vector.shape_cast %84 : vector<2x128xf32> to vector<1x2x128xf32>
    tpu.vector_store %arg15[%c1_60, %c0_61, %c0_62], %87 {strides = array<i32>} : memref<3x2x128xf32, #tpu.memory_space<vmem>>, vector<1x2x128xf32>,
    %c1_63 = arith.constant 1 : index
    %c0_64 = arith.constant 0 : index
    %c0_65 = arith.constant 0 : index
    %88 = vector.load %arg14[%c1_63, %c0_64, %c0_65] : memref<3x2x1xf32, #tpu.memory_space<vmem>>, vector<1x2x1xf32>
    %89 = vector.shape_cast %88 : vector<1x2x1xf32> to vector<2x1xf32>
    %90 = vector.shape_cast %78 : vector<2x1xf32> to vector<1x2x1xf32>
    tpu.vector_store %arg14[%c1_63, %c0_64, %c0_65], %90 {strides = array<i32>} : memref<3x2x1xf32, #tpu.memory_space<vmem>>, vector<1x2x1xf32>,
    %91 = vector.extract_strided_slice %54 {offsets = [0, 256], sizes = [2, 128], strides = [1, 1]} : vector<2x384xf32> to vector<2x128xf32>
    %92 = arith.subf %30, %91 : vector<2x128xf32>
    %cst_66 = arith.constant dense<0.000000e+00> : vector<2xf32>
    %93 = vector.multi_reduction <add>, %92, %cst_66 [1] : vector<2x128xf32> to vector<2xf32>
    %94 = vector.shape_cast %93 : vector<2xf32> to vector<2x1xf32>
    %cst_67 = arith.constant 1.280000e+02 : f32
    %95 = vector.broadcast %cst_67 : f32 to vector<2x1xf32>
    %96 = arith.divf %94, %95 : vector<2x1xf32>
    %97 = vector.broadcast %96 : vector<2x1xf32> to vector<2x128xf32>
    %98 = arith.addf %91, %97 : vector<2x128xf32>
    %c2_68 = arith.constant 2 : index
    %c0_69 = arith.constant 0 : index
    %c0_70 = arith.constant 0 : index
    %99 = vector.load %arg13[%c2_68, %c0_69, %c0_70] : memref<3x2x128xf32, #tpu.memory_space<vmem>>, vector<1x2x128xf32>
    %100 = vector.shape_cast %99 : vector<1x2x128xf32> to vector<2x128xf32>
    %101 = vector.shape_cast %98 : vector<2x128xf32> to vector<1x2x128xf32>
    tpu.vector_store %arg13[%c2_68, %c0_69, %c0_70], %101 {strides = array<i32>} : memref<3x2x128xf32, #tpu.memory_space<vmem>>, vector<1x2x128xf32>,
    %102 = arith.subf %98, %30 : vector<2x128xf32>
    %c2_71 = arith.constant 2 : index
    %c0_72 = arith.constant 0 : index
    %c0_73 = arith.constant 0 : index
    %103 = vector.load %arg15[%c2_71, %c0_72, %c0_73] : memref<3x2x128xf32, #tpu.memory_space<vmem>>, vector<1x2x128xf32>
    %104 = vector.shape_cast %103 : vector<1x2x128xf32> to vector<2x128xf32>
    %105 = vector.shape_cast %102 : vector<2x128xf32> to vector<1x2x128xf32>
    tpu.vector_store %arg15[%c2_71, %c0_72, %c0_73], %105 {strides = array<i32>} : memref<3x2x128xf32, #tpu.memory_space<vmem>>, vector<1x2x128xf32>,
    %c2_74 = arith.constant 2 : index
    %c0_75 = arith.constant 0 : index
    %c0_76 = arith.constant 0 : index
    %106 = vector.load %arg14[%c2_74, %c0_75, %c0_76] : memref<3x2x1xf32, #tpu.memory_space<vmem>>, vector<1x2x1xf32>
    %107 = vector.shape_cast %106 : vector<1x2x1xf32> to vector<2x1xf32>
    %108 = vector.shape_cast %96 : vector<2x1xf32> to vector<1x2x1xf32>
    tpu.vector_store %arg14[%c2_74, %c0_75, %c0_76], %108 {strides = array<i32>} : memref<3x2x1xf32, #tpu.memory_space<vmem>>, vector<1x2x1xf32>,
    return
  }
}

</mosaic_0001>

<bundles_post_ra>
// kernel: tpu_custom_call.1
= control target key start
LH: loop header
LB: loop body
LE: loop exit
PB: predicated region body
PF: predicated region fallthrough
CT: control target
= control target key end

     0   :  { %21 = vsyncpa [#allocation3], 0  ;;  %s1280_s0 = inlined_call_operand.hbm [shape: f32[2,45], index: 0, kind: input, shape index: {}]   ;;  %s1281_s1 = inlined_call_operand.hbm [shape: f32[45,64], index: 1, kind: input, shape index: {}]   ;;  %s1282_s2 = inlined_call_operand.hbm [shape: f32[1,64], index: 2, kind: input, shape index: {}]   ;;  %s1283_s3 = inlined_call_operand.hbm [shape: f32[64,384], index: 3, kind: input, shape index: {}]   ;;  %s1284_s4 = inlined_call_operand.vmem [shape: f32[1,384], index: 4, kind: input, shape index: {}]   ;;  %s1285_s5 = inlined_call_operand.hbm [shape: f32[128,128], index: 5, kind: input, shape index: {}]   ;;  %s1286_s6 = inlined_call_operand.hbm [shape: f32[128,128], index: 6, kind: input, shape index: {}]   ;;  %s1287_s7 = inlined_call_operand.hbm [shape: f32[1,128], index: 7, kind: input, shape index: {}]   ;;  %s1288_s8 = inlined_call_operand.vmem [shape: f32[1,384], index: 8, kind: input, shape index: {}]   ;;  %s1289_s9 = inlined_call_operand.hbm [shape: f32[128,384], index: 9, kind: input, shape index: {}]   ;;  %s1290_s10 = inlined_call_operand.hbm [shape: f32[3,2,128], index: 10, kind: output, shape index: {0}]   ;;  %s1291_s11 = inlined_call_operand.hbm [shape: f32[3,2,128], index: 11, kind: output, shape index: {1}]   ;;  %s1292_s12 = inlined_call_operand.hbm [shape: f32[2,128], index: 12, kind: output, shape index: {2}]   ;;  %s1293_s13 = inlined_call_operand.hbm [shape: f32[3,2,128], index: 13, kind: output, shape index: {3}]   ;;  %s1294_s14 = inlined_call_operand.vmem [shape: f32[3,2,1], index: 14, kind: output, shape index: {4}]   ;;  %s1295_s15 = inlined_call_operand.hbm [shape: f32[3,2,128], index: 15, kind: output, shape index: {5}]  }
   0x1   :  { %22 = vsyncpa [#allocation6], 0 }
   0x2   :  { %23 = vsyncpa [#allocation9], 0 }
   0x3   :  { %24 = vsyncpa [#allocation12], 0 }
   0x4   :  { %25 = vsyncpa [#allocation15], 0 }
   0x5   :  { %26 = vsyncpa [#allocation4], 0 }
   0x6   :  { %27 = vsyncpa [#allocation18], 0  ;;  %s44_s20 = sshll.u32 %s1281_s1, 4  ;;  %s45_s20 = int_to_ptr.hbm [resolvable:$true] %s44_s20 }
   0x7   :  { %28 = vsyncpa [#allocation21], 0  ;;  %s1063_s21 = smov [#allocation5]   ;;  %s68_s25 = sshll.u32 %s1283_s3, 4  ;;  %s69_s25 = int_to_ptr.hbm [resolvable:$true] %s68_s25 }
   0x8   :  { %s46_s22 = sshll.u32 %s1063_s21, 4  ;;  %s1064_s26 = smov 128   ;;  %s47_s22 = int_to_ptr.vmem [resolvable:$true] %s46_s22 }
   0x9   :  { %s1065_s27 = smov 8   ;;  %s1066_s28 = smov [#allocation8]  }
   0xa   :  { %52 = dma.hbm_to_vmem [thread:$0]  %s45_s20, 768, %s47_s22, [#allocation6], %s1064_s26, %s1064_s26, %s1065_s27  }
   0xb   :  { %s70_s29 = sshll.u32 %s1066_s28, 4  ;;  %s1067_s1 = smov 384   ;;  %s71_s29 = int_to_ptr.vmem [resolvable:$true] %s70_s29 }
   0xc   :  { %s1068_s30 = smov 24   ;;  %s96_s3 = sshll.u32 %s1286_s6, 4  ;;  %s97_s3 = int_to_ptr.hbm [resolvable:$true] %s96_s3 }
   0xd   :  { %76 = dma.hbm_to_vmem [thread:$0]  %s69_s25, 3072, %s71_s29, [#allocation9], %s1067_s1, %s1067_s1, %s1068_s30  }
   0xe   :  { %s1069_s18 = smov [#allocation11]   ;;  %s34_s22 = sshll.u32 %s1280_s0, 4  ;;  %s35_s22 = int_to_ptr.hbm [resolvable:$true] %s34_s22 }
   0xf   :  { %s98_s19 = sshll.u32 %s1069_s18, 4  ;;  %s1070_s23 = smov [#allocation2]   ;;  %s99_s19 = int_to_ptr.vmem [resolvable:$true] %s98_s19 }
  0x10   :  { %104 = dma.hbm_to_vmem [thread:$0]  %s97_s3, 2048, %s99_s19, [#allocation12], %s1064_s26, %s1064_s26, %s1065_s27  }
  0x11   :  { %s36_s24 = sshll.u32 %s1070_s23, 4  ;;  %s58_s29 = sshll.u32 %s1282_s2, 4  ;;  %s37_s24 = int_to_ptr.vmem [resolvable:$true] %s36_s24  ;;  %s59_s29 = int_to_ptr.hbm [resolvable:$true] %s58_s29 }
  0x12   :  { %39 = dma.hbm_to_vmem [thread:$0]  %s35_s22, 32, %s37_s24, [#allocation3]  }
  0x13   :  { %s83_s17 = sshll.u32 %s1285_s5, 4  ;;  %s1071_s18 = smov [#allocation7]   ;;  %s84_s17 = int_to_ptr.hbm [resolvable:$true] %s83_s17 }
  0x14   :  { %s60_s0 = sshll.u32 %s1071_s18, 4  ;;  %s1072_s3 = smov [#allocation10]   ;;  %s61_s0 = int_to_ptr.vmem [resolvable:$true] %s60_s0 }
  0x15   :  { %63 = dma.hbm_to_vmem [thread:$0]  %s59_s29, 16, %s61_s0, [#allocation6]  }
  0x16   :  { %s85_s19 = sshll.u32 %s1072_s3, 4  ;;  %s110_s23 = sshll.u32 %s1287_s7, 4  ;;  %s86_s19 = int_to_ptr.vmem [resolvable:$true] %s85_s19  ;;  %s111_s23 = int_to_ptr.hbm [resolvable:$true] %s110_s23 }
  0x17   :  { %91 = dma.hbm_to_vmem [thread:$0]  %s84_s17, 2048, %s86_s19, [#allocation9], %s1064_s26, %s1064_s26, %s1065_s27  }
  0x18   :  { %s122_s5 = sshll.u32 %s1289_s9, 4  ;;  %s1073_s24 = smov [#allocation13]   ;;  %s123_s5 = int_to_ptr.hbm [resolvable:$true] %s122_s5 }
  0x19   :  { %s112_s25 = sshll.u32 %s1073_s24, 4  ;;  %s1074_s28 = smov [#allocation14]   ;;  %s113_s25 = int_to_ptr.vmem [resolvable:$true] %s112_s25 }
  0x1a   :  { %115 = dma.hbm_to_vmem [thread:$0]  %s111_s23, 16, %s113_s25, [#allocation12]  }
  0x1b   :  { %s124_s29 = sshll.u32 %s1074_s28, 4  ;;  %s125_s29 = int_to_ptr.vmem [resolvable:$true] %s124_s29 }
  0x1c   :  { %130 = dma.hbm_to_vmem [thread:$0]  %s123_s5, 6144, %s125_s29, [#allocation15], %s1067_s1, %s1067_s1, %s1068_s30  }
  0x1d   :  { %1047 = dma.done.wait [#allocation3], 32  }
  0x1e   :  { %1048 = vsyncadd [#allocation3], 4294967264 }
  0x1f   :  { %1049 = dma.done.wait [#allocation6], 784  }
  0x20   :  { %1050 = vsyncadd [#allocation6], 4294966512 }
  0x21   :  { %1051 = dma.done.wait [#allocation9], 5120  }
  0x22   :  { %1052 = vsyncadd [#allocation9], 4294962176 }
  0x23   :  { %1053 = dma.done.wait [#allocation12], 2064  }
  0x24   :  { %1054 = vsyncadd [#allocation12], 4294965232 }
  0x25   :  { %1055 = dma.done.wait [#allocation15], 6144  }
  0x26   :  { %1056 = vsyncadd [#allocation15], 4294961152  ;;  %vm178_vm0 = vcmask 1044480   ;;  %v169_v0 = vld [vmem:[#allocation5 + $0x28] sm:$0x1f]  ;;  %v168_v1 = vld [vmem:[#allocation5 + $0x20] sm:$0xff] }
  0x27   :  { %702 = vmatpush.msk.msra.mxu0 %vm178_vm0, %v169_v0  ;;  %v167_v2 = vld [vmem:[#allocation5 + $0x18] sm:$0xff]  ;;  %v221_v4 = vld [vmem:[#allocation8 + $0x90] sm:$0xff]  ;;  %v166_v6 = vld [vmem:[#allocation5 + $0x10] sm:$0xff]  ;;  %vm174_vm1 = vcmask 367616   ;;  %vm235_vm2 = vcmask 523264   ;;  %vm563_vm5 = vcmask 1041408  }
  0x28   :  { %v224_v3 = vld [vmem:[#allocation8 + $0xa8] sm:$0xff]  ;;  %v225_v5 = vld [vmem:[#allocation8 + $0xb0] sm:$0xff]  ;;  %v218_v7 = vld [vmem:[#allocation8 + $0x78] sm:$0xff]  ;;  %s1075_s27 = smov [#allocation17]   ;;  %s1076_s16 = smov 32   ;;  %vm579_vm7 = vcmask 1024  }
  0x29   :  { %193 = vmatpush.msra.mxu0 %v168_v1  ;;  %247 = vmatpush.msra.mxu3 %v224_v3  ;;  %v222_v8 = vld [vmem:[#allocation8 + $0x98] sm:$0xff]  ;;  %v219_v9 = vld [vmem:[#allocation8 + $0x80] sm:$0xff]  ;;  %v216_v12 = vld [vmem:[#allocation8 + $0x68] sm:$0xff]  ;;  %s624_s1 = sshll.u32 %s1075_s27, 4  ;;  %s1077_s17 = smov 2   ;;  %s625_s1 = int_to_ptr.vmem [resolvable:$true] %s624_s1 }
  0x2a   :  { %267 = vmatpush.msra.mxu2 %v225_v5  ;;  %v165_v10 = vld [vmem:[#allocation5 + $0x8] sm:$0xff]  ;;  %v215_v11 = vld [vmem:[#allocation8 + $0x60] sm:$0xff]  ;;  %v164_v13 = vld [vmem:[#allocation5] sm:$0xff]  ;;  %s613_s0 = sshll.u32 %s1290_s10, 4  ;;  %s1078_s3 = smov [#allocation16]   ;;  %s614_s0 = int_to_ptr.hbm [resolvable:$true] %s613_s0 }
  0x2b   :  { %194 = vmatpush.msra.mxu0 %v167_v2  ;;  %248 = vmatpush.msra.mxu3 %v221_v4  ;;  %v212_v14 = vld [vmem:[#allocation8 + $0x48] sm:$0xff]  ;;  %v213_v16 = vld [vmem:[#allocation8 + $0x50] sm:$0xff]  ;;  %v206_v18 = vld [vmem:[#allocation8 + $0x18] sm:$0xff]  ;;  %s611_s19 = sshll.u32 %s1078_s3, 4  ;;  %s1079_s21 = smov [#allocation19]   ;;  %s612_s19 = int_to_ptr.vmem [resolvable:$true] %s611_s19 }
  0x2c   :  { %268 = vmatpush.msra.mxu2 %v222_v8  ;;  %v163_v15 = vld [vmem:[#allocation2] sm:$0x3]  ;;  %v209_v17 = vld [vmem:[#allocation8 + $0x30] sm:$0xff]  ;;  %v203_v19 = vld [vmem:[#allocation8] sm:$0xff]  ;;  %s638_s20 = sshll.u32 %s1079_s21, 4  ;;  %s640_s22 = sshll.u32 %s1292_s12, 4  ;;  %s639_s20 = int_to_ptr.vmem [resolvable:$true] %s638_s20  ;;  %s641_s22 = int_to_ptr.hbm [resolvable:$true] %s640_s22 }
  0x2d   :  { %195 = vmatpush.msra.mxu0 %v166_v6  ;;  %249 = vmatpush.msra.mxu3 %v218_v7  ;;  %v226_v20 = vld [vmem:[#allocation8 + $0xb8] sm:$0xff]  ;;  %v223_v22 = vld [vmem:[#allocation8 + $0xa0] sm:$0xff]  ;;  %v220_v24 = vld [vmem:[#allocation8 + $0x88] sm:$0xff]  ;;  %s1081_s12 = smov [#allocation20]   ;;  %s650_s29 = sshll.u32 %s1293_s13, 4  ;;  %s651_s29 = int_to_ptr.hbm [resolvable:$true] %s650_s29 }
  0x2e   :  { %269 = vmatpush.msra.mxu2 %v219_v9  ;;  %v210_v21 = vld [vmem:[#allocation8 + $0x38] sm:$0xff]  ;;  %v207_v23 = vld [vmem:[#allocation8 + $0x20] sm:$0xff]  ;;  %v204_v25 = vld [vmem:[#allocation8 + $0x8] sm:$0xff]  ;;  %s648_s24 = sshll.u32 %s1081_s12, 4  ;;  %s665_s30 = sshll.u32 %s1295_s15, 4  ;;  %s649_s24 = int_to_ptr.vmem [resolvable:$true] %s648_s24  ;;  %s666_s30 = int_to_ptr.hbm [resolvable:$true] %s665_s30 }
  0x2f   :  { %196 = vmatpush.msra.mxu0 %v165_v10  ;;  %250 = vmatpush.msra.mxu3 %v215_v11  ;;  %v217_v26 = vld [vmem:[#allocation8 + $0x70] sm:$0xff]  ;;  %v214_v27 = vld [vmem:[#allocation8 + $0x58] sm:$0xff]  ;;  %v211_v28 = vld [vmem:[#allocation8 + $0x40] sm:$0xff] }
  0x30   :  { %270 = vmatpush.msra.mxu2 %v216_v12  ;;  %v208_v29 = vld [vmem:[#allocation8 + $0x28] sm:$0xff]  ;;  %v205_v30 = vld [vmem:[#allocation8 + $0x10] sm:$0xff]  ;;  %v314_v31 = vld [vmem:[#allocation10 + $0x78] sm:$0xff] }
  0x31   :  { %197 = vmatpush.msra.mxu0 %v164_v13  ;;  %251 = vmatpush.msra.mxu3 %v212_v14  ;;  %v313_v32 = vld [vmem:[#allocation10 + $0x70] sm:$0xff]  ;;  %v312_v33 = vld [vmem:[#allocation10 + $0x68] sm:$0xff]  ;;  %v311_v34 = vld [vmem:[#allocation10 + $0x60] sm:$0xff] }
  0x32   :  { %703 = vmatmul.msk.f32.vlgmr.msra.gmra.mxu0 %vm174_vm1, %v163_v15  ;;  %271 = vmatpush.msra.mxu2 %v213_v16  ;;  %v310_v35 = vld [vmem:[#allocation10 + $0x58] sm:$0xff]  ;;  %v309_v36 = vld [vmem:[#allocation10 + $0x50] sm:$0xff]  ;;  %v308_v37 = vld [vmem:[#allocation10 + $0x48] sm:$0xff] }
  0x33   :  { %252 = vmatpush.msra.mxu3 %v209_v17  ;;  %315 = vmatpush.msrb.mxu0 %v314_v31  ;;  %v307_v38 = vld [vmem:[#allocation10 + $0x40] sm:$0xff]  ;;  %v306_v39 = vld [vmem:[#allocation10 + $0x38] sm:$0xff]  ;;  %v305_v41 = vld [vmem:[#allocation10 + $0x30] sm:$0xff] }
  0x34   :  { %272 = vmatpush.msra.mxu2 %v210_v21  ;;  %337 = vmatpush.msra.mxu1 %v314_v31  ;;  %v729_v40 = vld [vmem:[#allocation7] ss:$0 sm:$0xff]  ;;  %v304_v42 = vld [vmem:[#allocation10 + $0x28] sm:$0xff]  ;;  %v303_v45 = vld [vmem:[#allocation10 + $0x20] sm:$0xff] }
  0x35   :  { %253 = vmatpush.msra.mxu3 %v206_v18  ;;  %316 = vmatpush.msrb.mxu0 %v313_v32  ;;  %v302_v47 = vld [vmem:[#allocation10 + $0x18] sm:$0xff]  ;;  %v301_v48 = vld [vmem:[#allocation10 + $0x10] sm:$0xff]  ;;  %v300_v49 = vld [vmem:[#allocation10 + $0x8] sm:$0xff] }
  0x36   :  { %273 = vmatpush.msra.mxu2 %v207_v23  ;;  %338 = vmatpush.msra.mxu1 %v313_v32  ;;  %v299_v50 = vld [vmem:[#allocation10] sm:$0xff]  ;;  %v227_v51 = vld [vmem:[%s1284_s4] sm:$0x7]  ;;  %v417_v61 = vld [vmem:[#allocation11 + $0x78] sm:$0xff]  ;;  %s1082_s4 = smov [#allocation22]  }
  0x37   :  { %254 = vmatpush.msra.mxu3 %v203_v19  ;;  %317 = vmatpush.msrb.mxu0 %v312_v33  ;;  %v229_v52 = vperm.slane %v227_v51, 0  ;;  %v230_v53 = vperm.slane %v227_v51, 1  ;;  %v231_v58 = vperm.slane %v227_v51, 2  ;;  %v416_v62 = vld [vmem:[#allocation11 + $0x70] sm:$0xff]  ;;  %v415_v63 = vld [vmem:[#allocation11 + $0x68] sm:$0xff]  ;;  %v414_v0 = vld [vmem:[#allocation11 + $0x60] sm:$0xff] }
  0x38   :  { %274 = vmatpush.msra.mxu2 %v204_v25  ;;  %339 = vmatpush.msra.mxu1 %v312_v33  ;;  %v413_v1 = vld [vmem:[#allocation11 + $0x58] sm:$0xff]  ;;  %v412_v2 = vld [vmem:[#allocation11 + $0x50] sm:$0xff]  ;;  %v411_v3 = vld [vmem:[#allocation11 + $0x48] sm:$0xff]  ;;  %s663_s26 = sshll.u32 %s1082_s4, 4  ;;  %s664_s26 = int_to_ptr.vmem [resolvable:$true] %s663_s26 }
  0x39   :  { %287 = vmatpush.msrb.mxu3 %v226_v20  ;;  %318 = vmatpush.msrb.mxu0 %v311_v34  ;;  %v410_v4 = vld [vmem:[#allocation11 + $0x40] sm:$0xff]  ;;  %v409_v5 = vld [vmem:[#allocation11 + $0x38] sm:$0xff]  ;;  %v408_v6 = vld [vmem:[#allocation11 + $0x30] sm:$0xff] }
  0x3a   :  { %361 = vmatpush.msrb.mxu2 %v314_v31  ;;  %340 = vmatpush.msra.mxu1 %v311_v34  ;;  %v407_v7 = vld [vmem:[#allocation11 + $0x28] sm:$0xff]  ;;  %v406_v8 = vld [vmem:[#allocation11 + $0x20] sm:$0xff]  ;;  %v405_v9 = vld [vmem:[#allocation11 + $0x18] sm:$0xff] }
  0x3b   :  { %288 = vmatpush.msrb.mxu3 %v223_v22  ;;  %319 = vmatpush.msrb.mxu0 %v310_v35  ;;  %v404_v12 = vld [vmem:[#allocation11 + $0x10] sm:$0xff]  ;;  %v403_v13 = vld [vmem:[#allocation11 + $0x8] sm:$0xff]  ;;  %v402_v14 = vld [vmem:[#allocation11] sm:$0xff] }
  0x3c   :  { %362 = vmatpush.msrb.mxu2 %v313_v32  ;;  %341 = vmatpush.msra.mxu1 %v310_v35  ;;  %v489_v15 = vld [vmem:[#allocation14 + $0x168] sm:$0xff]  ;;  %v490_v16 = vld [vmem:[#allocation14 + $0x170] sm:$0xff]  ;;  %v491_v17 = vld [vmem:[#allocation14 + $0x178] sm:$0xff] }
  0x3d   :  { %289 = vmatpush.msrb.mxu3 %v220_v24  ;;  %320 = vmatpush.msrb.mxu0 %v309_v36  ;;  %v486_v18 = vld [vmem:[#allocation14 + $0x150] sm:$0xff]  ;;  %v487_v19 = vld [vmem:[#allocation14 + $0x158] sm:$0xff]  ;;  %v488_v20 = vld [vmem:[#allocation14 + $0x160] sm:$0xff] }
  0x3e   :  { %363 = vmatpush.msrb.mxu2 %v312_v33  ;;  %342 = vmatpush.msra.mxu1 %v309_v36  ;;  %v483_v21 = vld [vmem:[#allocation14 + $0x138] sm:$0xff]  ;;  %v484_v22 = vld [vmem:[#allocation14 + $0x140] sm:$0xff]  ;;  %v485_v25 = vld [vmem:[#allocation14 + $0x148] sm:$0xff] }
  0x3f   :  { %290 = vmatpush.msrb.mxu3 %v217_v26  ;;  %321 = vmatpush.msrb.mxu0 %v308_v37  ;;  %v480_v26 = vld [vmem:[#allocation14 + $0x120] sm:$0xff]  ;;  %v478_v31 = vld [vmem:[#allocation14 + $0x110] sm:$0xff] }
  0x40   :  { %364 = vmatpush.msrb.mxu2 %v311_v34  ;;  %343 = vmatpush.msra.mxu1 %v308_v37  ;;  %v479_v34 = vld [vmem:[#allocation14 + $0x118] sm:$0xff]  ;;  %v464_v51 = vld [vmem:[#allocation14 + $0xa0] sm:$0xff] }
  0x41   :  { %291 = vmatpush.msrb.mxu3 %v214_v27  ;;  %322 = vmatpush.msrb.mxu0 %v307_v38  ;;  %v481_v27 = vld [vmem:[#allocation14 + $0x128] sm:$0xff] }
  0x42   :  { %365 = vmatpush.msrb.mxu2 %v310_v35  ;;  %344 = vmatpush.msra.mxu1 %v307_v38  ;;  %v474_v35 = vld [vmem:[#allocation14 + $0xf0] sm:$0xff] }
  0x43   :  { %292 = vmatpush.msrb.mxu3 %v211_v28  ;;  %323 = vmatpush.msrb.mxu0 %v306_v39  ;;  %v482_v28 = vld [vmem:[#allocation14 + $0x130] sm:$0xff] }
  0x44   :  { %366 = vmatpush.msrb.mxu2 %v309_v36  ;;  %345 = vmatpush.msra.mxu1 %v306_v39  ;;  %v475_v36 = vld [vmem:[#allocation14 + $0xf8] sm:$0xff] }
  0x45   :  { %293 = vmatpush.msrb.mxu3 %v208_v29  ;;  %324 = vmatpush.msrb.mxu0 %v305_v41 }
  0x46   :  { %367 = vmatpush.msrb.mxu2 %v308_v37  ;;  %346 = vmatpush.msra.mxu1 %v305_v41 }
  0x47   :  { %294 = vmatpush.msrb.mxu3 %v205_v30  ;;  %325 = vmatpush.msrb.mxu0 %v304_v42  ;;  %v477_v30 = vld [vmem:[#allocation14 + $0x108] sm:$0xff] }
  0x48   :  { %368 = vmatpush.msrb.mxu2 %v307_v38  ;;  %347 = vmatpush.msra.mxu1 %v304_v42  ;;  %v476_v38 = vld [vmem:[#allocation14 + $0x100] sm:$0xff] }
  0x49   :  { %326 = vmatpush.msrb.mxu0 %v303_v45 }
  0x4a   :  { %369 = vmatpush.msrb.mxu2 %v306_v39  ;;  %348 = vmatpush.msra.mxu1 %v303_v45  ;;  %v471_v39 = vld [vmem:[#allocation14 + $0xd8] sm:$0xff] }
  0x4b   :  { %327 = vmatpush.msrb.mxu0 %v302_v47 }
  0x4c   :  { %370 = vmatpush.msrb.mxu2 %v305_v41  ;;  %349 = vmatpush.msra.mxu1 %v302_v47  ;;  %v473_v41 = vld [vmem:[#allocation14 + $0xe8] sm:$0xff] }
  0x4d   :  { %328 = vmatpush.msrb.mxu0 %v301_v48 }
  0x4e   :  { %371 = vmatpush.msrb.mxu2 %v304_v42  ;;  %350 = vmatpush.msra.mxu1 %v301_v48  ;;  %v468_v42 = vld [vmem:[#allocation14 + $0xc0] sm:$0xff] }
  0x4f   :  { %329 = vmatpush.msrb.mxu0 %v300_v49 }
  0x50   :  { %372 = vmatpush.msrb.mxu2 %v303_v45  ;;  %351 = vmatpush.msra.mxu1 %v300_v49  ;;  %v465_v45 = vld [vmem:[#allocation14 + $0xa8] sm:$0xff] }
  0x51   :  { %330 = vmatpush.msrb.mxu0 %v299_v50 }
  0x52   :  { %373 = vmatpush.msrb.mxu2 %v302_v47  ;;  %352 = vmatpush.msra.mxu1 %v299_v50  ;;  %v467_v47 = vld [vmem:[#allocation14 + $0xb8] sm:$0xff] }
  0x53   :  { %492 = vmatpush.msra.mxu0 %v489_v15  ;;  %v444_v15 = vld [vmem:[#allocation14] sm:$0xff] }
  0x54   :  { %374 = vmatpush.msrb.mxu2 %v301_v48  ;;  %512 = vmatpush.msrb.mxu1 %v490_v16  ;;  %v462_v48 = vld [vmem:[#allocation14 + $0x90] sm:$0xff]  ;;  %v445_v16 = vld [vmem:[#allocation14 + $0x8] sm:$0xff] }
  0x55   :  { %493 = vmatpush.msra.mxu0 %v486_v18  ;;  %v730_v18 = vld [vmem:[#allocation13] ss:$0 sm:$0xff] }
  0x56   :  { %375 = vmatpush.msrb.mxu2 %v300_v49  ;;  %513 = vmatpush.msrb.mxu1 %v487_v19  ;;  %v463_v49 = vld [vmem:[#allocation14 + $0x98] sm:$0xff] }
  0x57   :  { %494 = vmatpush.msra.mxu0 %v483_v21  ;;  %v443_v21 = vld [vmem:[%s1288_s8] sm:$0x7]  ;;  %s626_s8 = sshll.u32 %s1291_s11, 4  ;;  %s627_s8 = int_to_ptr.hbm [resolvable:$true] %s626_s8 }
  0x58   :  { %376 = vmatpush.msrb.mxu2 %v299_v50  ;;  %514 = vmatpush.msrb.mxu1 %v484_v22  ;;  %v553_v22 = vperm.slane %v443_v21, 0 }
  0x59   :  { %495 = vmatpush.msra.mxu0 %v480_v26 }
  0x5a   :  { %515 = vmatpush.msrb.mxu1 %v481_v27 }
  0x5b   :  { %496 = vmatpush.msra.mxu0 %v477_v30 }
  0x5c   :  { %516 = vmatpush.msrb.mxu1 %v478_v31 }
  0x5d   :  { %497 = vmatpush.msra.mxu0 %v474_v35 }
  0x5e   :  { %517 = vmatpush.msrb.mxu1 %v475_v36 }
  0x5f   :  { %498 = vmatpush.msra.mxu0 %v471_v39 }
  0x61   :  { %499 = vmatpush.msra.mxu0 %v468_v42 }
  0x63   :  { %500 = vmatpush.msra.mxu0 %v465_v45 }
  0x65   :  { %501 = vmatpush.msra.mxu0 %v462_v48 }
  0xaf   :  { %v199_v43 = vpop.f32.mrf.mxu0 }
  0xb0   :  { %v200_v44 = vadd.f32 %v729_v40, %v199_v43  ;;  %v472_v40 = vld [vmem:[#allocation14 + $0xe0] sm:$0xff]  ;;  %v469_v43 = vld [vmem:[#allocation14 + $0xc8] sm:$0xff] }
  0xb1   :  { %518 = vmatpush.msrb.mxu1 %v472_v40 }
  0xb2   :  { %v202_v46 = vmax.f32 %v200_v44, 0.0  ;;  %v470_v44 = vld [vmem:[#allocation14 + $0xd0] sm:$0xff] }
  0xb3   :  { %519 = vmatpush.msrb.mxu1 %v469_v43 }
  0xb4   :  { %704 = vmatmul.msk.f32.vlgmr.msra.gmra.mxu3 %vm235_vm2, %v202_v46  ;;  %705 = vmatmul.msk.f32.vlgmr.msra.gmra.mxu2 %vm235_vm2, %v202_v46 }
  0xb5   :  { %422 = vmatpush.msra.mxu3 %v417_v61  ;;  %532 = vmatpush.msra.mxu2 %v491_v17  ;;  %v457_v61 = vld [vmem:[#allocation14 + $0x68] sm:$0xff]  ;;  %v446_v17 = vld [vmem:[#allocation14 + $0x10] sm:$0xff] }
  0xb7   :  { %423 = vmatpush.msra.mxu3 %v416_v62  ;;  %533 = vmatpush.msra.mxu2 %v488_v20  ;;  %v458_v62 = vld [vmem:[#allocation14 + $0x70] sm:$0xff] }
  0xb9   :  { %424 = vmatpush.msra.mxu3 %v415_v63  ;;  %534 = vmatpush.msra.mxu2 %v485_v25  ;;  %v554_v25 = vperm.slane %v443_v21, 1 }
  0xbb   :  { %425 = vmatpush.msra.mxu3 %v414_v0  ;;  %535 = vmatpush.msra.mxu2 %v482_v28  ;;  %v453_v0 = vld [vmem:[#allocation14 + $0x48] sm:$0xff]  ;;  %v555_v28 = vperm.slane %v443_v21, 2 }
  0xbc   :  { %706 = vmatmul.msk.f32.vlgmr.msrb.gmra.mxu3 %vm235_vm2, %v202_v46  ;;  %v466_v46 = vld [vmem:[#allocation14 + $0xb0] sm:$0xff] }
  0xbd   :  { %426 = vmatpush.msra.mxu3 %v413_v1  ;;  %536 = vmatpush.msra.mxu2 %v479_v34  ;;  %v454_v1 = vld [vmem:[#allocation14 + $0x50] sm:$0xff] }
  0xbe   :  { %520 = vmatpush.msrb.mxu1 %v466_v46 }
  0xbf   :  { %427 = vmatpush.msra.mxu3 %v412_v2  ;;  %537 = vmatpush.msra.mxu2 %v476_v38  ;;  %v455_v2 = vld [vmem:[#allocation14 + $0x58] sm:$0xff] }
  0xc0   :  { %521 = vmatpush.msrb.mxu1 %v463_v49 }
  0xc1   :  { %428 = vmatpush.msra.mxu3 %v411_v3  ;;  %538 = vmatpush.msra.mxu2 %v473_v41 }
  0xc3   :  { %429 = vmatpush.msra.mxu3 %v410_v4  ;;  %539 = vmatpush.msra.mxu2 %v470_v44  ;;  %v450_v4 = vld [vmem:[#allocation14 + $0x30] sm:$0xff] }
  0xc5   :  { %430 = vmatpush.msra.mxu3 %v409_v5  ;;  %540 = vmatpush.msra.mxu2 %v467_v47  ;;  %v451_v5 = vld [vmem:[#allocation14 + $0x38] sm:$0xff] }
  0xc7   :  { %431 = vmatpush.msra.mxu3 %v408_v6  ;;  %541 = vmatpush.msra.mxu2 %v464_v51  ;;  %v452_v6 = vld [vmem:[#allocation14 + $0x40] sm:$0xff] }
  0xc9   :  { %432 = vmatpush.msra.mxu3 %v407_v7 }
  0xcb   :  { %433 = vmatpush.msra.mxu3 %v406_v8 }
  0xcd   :  { %434 = vmatpush.msra.mxu3 %v405_v9 }
  0xcf   :  { %435 = vmatpush.msra.mxu3 %v404_v12  ;;  %v447_v12 = vld [vmem:[#allocation14 + $0x18] sm:$0xff] }
  0xd1   :  { %436 = vmatpush.msra.mxu3 %v403_v13  ;;  %v448_v13 = vld [vmem:[#allocation14 + $0x20] sm:$0xff] }
  0xd3   :  { %437 = vmatpush.msra.mxu3 %v402_v14  ;;  %v449_v14 = vld [vmem:[#allocation14 + $0x28] sm:$0xff] }
 0x137   :  { %v256_v54 = vpop.f32.mrf.mxu3  ;;  %v276_v55 = vpop.f32.mrf.mxu2 }
 0x138   :  { %v1208_v56 = vadd.f32 %v256_v54, %v229_v52  ;;  %v1210_v57 = vadd.f32 %v276_v55, %v230_v53  ;;  %v459_v53 = vld [vmem:[#allocation14 + $0x78] sm:$0xff]  ;;  %v460_v54 = vld [vmem:[#allocation14 + $0x80] sm:$0xff]  ;;  %v461_v55 = vld [vmem:[#allocation14 + $0x88] sm:$0xff] }
 0x139   :  { %502 = vmatpush.msra.mxu0 %v459_v53  ;;  %522 = vmatpush.msrb.mxu1 %v460_v54 }
 0x13a   :  { %335 = vst [vmem:[#allocation16] sm:$0x3] %v1208_v56  ;;  %331 = vmatmul.f32.vlgmr.msrb.gmra.mxu0 %v1208_v56  ;;  %353 = vmatmul.f32.vlgmr.msra.gmra.mxu1 %v1210_v57 }
 0x13b   :  { %358 = vst [vmem:[#allocation16 + $0x2] sm:$0x3] %v1210_v57  ;;  %542 = vmatpush.msra.mxu2 %v461_v55  ;;  %523 = vmatpush.msrb.mxu1 %v457_v61 }
 0x13d   :  { %543 = vmatpush.msra.mxu2 %v458_v62  ;;  %524 = vmatpush.msrb.mxu1 %v454_v1 }
 0x13f   :  { %v296_v59 = vpop.f32.mrf.mxu3  ;;  %544 = vmatpush.msra.mxu2 %v455_v2  ;;  %525 = vmatpush.msrb.mxu1 %v451_v5 }
 0x140   :  { %v1216_v60 = vadd.f32 %v296_v59, %v231_v58  ;;  %v456_v59 = vld [vmem:[#allocation14 + $0x60] sm:$0xff] }
 0x141   :  { %503 = vmatpush.msra.mxu0 %v456_v59  ;;  %545 = vmatpush.msra.mxu2 %v452_v6 }
 0x142   :  { %382 = vst [vmem:[#allocation16 + $0x4] sm:$0x3] %v1216_v60  ;;  %377 = vmatmul.f32.vlgmr.msrb.gmra.mxu2 %v1216_v60  ;;  %526 = vmatpush.msrb.mxu1 %v448_v13 }
 0x143   :  { %504 = vmatpush.msra.mxu0 %v453_v0  ;;  %546 = vmatpush.msra.mxu2 %v449_v14  ;;  %619 = dma.vmem_to_hbm [thread:$0]  %s612_s19, 96, %s614_s0, [#allocation4], %s1076_s16, %s1076_s16, %s1077_s17  }
 0x144   :  { %527 = vmatpush.msrb.mxu1 %v445_v16 }
 0x145   :  { %505 = vmatpush.msra.mxu0 %v450_v4  ;;  %547 = vmatpush.msra.mxu2 %v446_v17 }
 0x147   :  { %506 = vmatpush.msra.mxu0 %v447_v12 }
 0x149   :  { %507 = vmatpush.msra.mxu0 %v444_v15 }
 0x1b7   :  { %v332_v10 = vpop.f32.mrf.mxu0  ;;  %v354_v11 = vpop.f32.mrf.mxu1 }
 0x1b8   :  { %336 = vst [vmem:[#allocation17] sm:$0x3] %v332_v10  ;;  %v385_v23 = vmul.f32 %v332_v10, %v332_v10  ;;  %v386_v24 = vmul.f32 %v354_v11, %v354_v11 }
 0x1b9   :  { %360 = vst [vmem:[#allocation17 + $0x2] sm:$0x3] %v354_v11 }
 0x1ba   :  { %v387_v32 = vadd.f32 %v386_v24, %v385_v23 }
 0x1c5   :  { %v378_v29 = vpop.f32.mrf.mxu2 }
 0x1c6   :  { %384 = vst [vmem:[#allocation17 + $0x4] sm:$0x3] %v378_v29  ;;  %v388_v33 = vmul.f32 %v378_v29, %v378_v29 }
 0x1c7   :  { %632 = dma.vmem_to_hbm [thread:$0]  %s625_s1, 96, %s627_s8, [#allocation18], %s1076_s16, %s1076_s16, %s1077_s17  }
 0x1c8   :  { %v1220_v37 = vadd.f32 %v388_v33, %v387_v32 }
 0x1ca   :  { %731 = vrsqrt.f32 %v1220_v37  ;;  %vm397_vm3 = vcmp.eq.f32.partialorder %v1220_v37, inf  ;;  %v400_v9 = vand.u32 2147483648, %v1220_v37  ;;  %vm399_vm4 = vcmp.eq.f32.partialorder %v1220_v37, 0.0 }
 0x1d0   :  { %v732_v50 = vpop.eup %731 }
 0x1d1   :  { %v391_v52 = vmul.f32 %v732_v50, %v1220_v37 }
 0x1d3   :  { %v392_v58 = vmul.f32 %v732_v50, %v391_v52 }
 0x1d5   :  { %v393_v63 = vmul.f32 0.5, %v392_v58 }
 0x1d7   :  { %v394_v3 = vsub.f32 1.5, %v393_v63 }
 0x1d9   :  { %v395_v7 = vmul.f32 %v732_v50, %v394_v3 }
 0x1db   :  { %v396_v8 = vmul.f32 %v395_v7, %v1220_v37 }
 0x1dd   :  { %v398_v10 = vsel %vm397_vm3, %v1220_v37, %v396_v8  ;;  %v1080_v37 = vmov 128.0  }
 0x1de   :  { %v401_v11 = vsel %vm399_vm4, %v400_v9, %v398_v10  ;;  %733 = vrcp.f32 %v1080_v37 }
 0x1df   :  { %438 = vmatmul.f32.vlgmr.msra.gmra.mxu3 %v401_v11 }
 0x1e4   :  { %v734_v38 = vpop.eup %733 }
 0x1e5   :  { %v568_v39 = vmul.f32 128.0, %v734_v38  ;;  %vm572_vm6 = vweird.f32 %v734_v38 }
 0x1e7   :  { %v569_v40 = vsub.f32 1.0, %v568_v39 }
 0x1e9   :  { %v570_v41 = vmul.f32 %v734_v38, %v569_v40 }
 0x1eb   :  { %v571_v42 = vadd.f32 %v734_v38, %v570_v41 }
 0x1ed   :  { %v573_v43 = vsel %vm572_vm6, %v734_v38, %v571_v42 }
 0x262   :  { %v439_v19 = vpop.f32.mrf.mxu3 }
 0x263   :  { %v440_v20 = vadd.f32 %v730_v18, %v439_v19 }
 0x265   :  { %442 = vst [vmem:[#allocation19] sm:$0x3] %v440_v20  ;;  %508 = vmatmul.f32.vlgmr.msra.gmra.mxu0 %v440_v20  ;;  %528 = vmatmul.f32.vlgmr.msrb.gmra.mxu1 %v440_v20 }
 0x266   :  { %548 = vmatmul.f32.vlgmr.msra.gmra.mxu2 %v440_v20  ;;  %643 = dma.vmem_to_hbm [thread:$0]  %s639_s20, 32, %s641_s22, [#allocation18]  }
 0x2e2   :  { %v509_v23 = vpop.f32.mrf.mxu0  ;;  %v529_v26 = vpop.f32.mrf.mxu1 }
 0x2e3   :  { %v559_v24 = vadd.f32 %v553_v22, %v509_v23  ;;  %v560_v29 = vadd.f32 %v554_v25, %v529_v26 }
 0x2e5   :  { %v562_v27 = vsub.f32 %v1208_v56, %v559_v24  ;;  %v581_v33 = vsub.f32 %v1210_v57, %v560_v29 }
 0x2e7   :  { %v564_v30 = vsel %vm563_vm5, %v562_v27, 0.0  ;;  %v582_v36 = vsel %vm563_vm5, %v581_v33, 0.0 }
 0x2e8   :  { %565 = vadd.xlane.f32.xlu0 %v564_v30 }
 0x2e9   :  { %v549_v31 = vpop.f32.mrf.mxu2 }
 0x2ea   :  { %v561_v32 = vadd.f32 %v555_v28, %v549_v31 }
 0x2ec   :  { %v594_v34 = vsub.f32 %v1216_v60, %v561_v32 }
 0x2ee   :  { %v595_v35 = vsel %vm563_vm5, %v594_v34, 0.0 }
 0x2ef   :  { %596 = vadd.xlane.f32.xlu1 %v595_v35 }
 0x2f0   :  { %583 = vadd.xlane.f32.xlu0 %v582_v36 }
 0x35b   :  { %v566_v44 = vpop.xlane.xlu0 %565 }
 0x35c   :  { %v574_v45 = vmul.f32 %v573_v43, %v566_v44 }
 0x35e   :  { %v575_v46 = vadd.f32 %v574_v45, %v559_v24  ;;  %580 = vst.msk [vmem:[%s1294_s14] sm:$0x3] %vm579_vm7, %v574_v45 }
 0x360   :  { %576 = vst [vmem:[#allocation20] sm:$0x3] %v575_v46  ;;  %v577_v47 = vsub.f32 %v575_v46, %v1208_v56 }
 0x362   :  { %578 = vst [vmem:[#allocation22] sm:$0x3] %v577_v47  ;;  %v597_v48 = vpop.xlane.xlu1 %596 }
 0x363   :  { %v598_v49 = vmul.f32 %v597_v48, %v573_v43  ;;  %v584_v50 = vpop.xlane.xlu0 %583 }
 0x364   :  { %v585_v51 = vmul.f32 %v584_v50, %v573_v43 }
 0x365   :  { %v599_v52 = vadd.f32 %v598_v49, %v561_v32  ;;  %708 = vst.msk [vmem:[%s1294_s14 + $0x4] sm:$0x3] %vm579_vm7, %v598_v49 }
 0x366   :  { %v586_v56 = vadd.f32 %v585_v51, %v560_v29  ;;  %707 = vst.msk [vmem:[%s1294_s14 + $0x2] sm:$0x3] %vm579_vm7, %v585_v51 }
 0x367   :  { %601 = vst [vmem:[#allocation20 + $0x4] sm:$0x3] %v599_v52  ;;  %v602_v53 = vsub.f32 %v599_v52, %v1216_v60 }
 0x368   :  { %588 = vst [vmem:[#allocation20 + $0x2] sm:$0x3] %v586_v56  ;;  %v589_v54 = vsub.f32 %v586_v56, %v1210_v57 }
 0x369   :  { %604 = vst [vmem:[#allocation22 + $0x4] sm:$0x3] %v602_v53  ;;  %656 = dma.vmem_to_hbm [thread:$0]  %s649_s24, 96, %s651_s29, [#allocation21], %s1076_s16, %s1076_s16, %s1077_s17  }
 0x36a   :  { %591 = vst [vmem:[#allocation22 + $0x2] sm:$0x3] %v589_v54 }
 0x36b   :  { %671 = dma.vmem_to_hbm [thread:$0]  %s664_s26, 96, %s666_s30, [#allocation21], %s1076_s16, %s1076_s16, %s1077_s17  }
 0x36c   :  { %1057 = dma.done.wait [#allocation4], 96  }
 0x36d   :  { %1058 = vsyncadd [#allocation4], 4294967200 }
 0x36e   :  { %1059 = dma.done.wait [#allocation18], 128  }
 0x36f   :  { %1060 = vsyncadd [#allocation18], 4294967168 }
 0x370   :  { %1061 = dma.done.wait [#allocation21], 192  }
 0x371   :  { %1062 = vsyncadd [#allocation21], 4294967104 }
 0x372   :  { %694 = vsyncpa [#allocation3], 1 }
 0x373   :  { %695 = vsyncpa [#allocation6], 1 }
 0x374   :  { %696 = vsyncpa [#allocation9], 1 }
 0x375   :  { %697 = vsyncpa [#allocation12], 1 }
 0x376   :  { %698 = vsyncpa [#allocation15], 1 }
 0x377   :  { %699 = vsyncpa [#allocation4], 1 }
 0x378   :  { %700 = vsyncpa [#allocation18], 1 }
 0x379   :  { %701 = vsyncpa [#allocation21], 1 }

</bundles_post_ra>
